<compile_context>
chip_gen: v5e
topology: v5e:2x2
jax: 0.10.0
libtpu: 0.0.40
codegen_flags: <defaults>
</compile_context>

<pallas_src>
import functools

import jax
import jax.numpy as jnp
from jax.experimental import pallas as pl
from jax.experimental.pallas import tpu as pltpu


def _round_up(x: int, m: int) -> int:
    return ((x + m - 1) // m) * m


def _softplus(x):
    # Matches torch.nn.Softplus(beta=1, threshold=20): linear above threshold.
    return jnp.where(x > 20.0, x, jnp.log1p(jnp.exp(jnp.minimum(x, 20.0))))


def _autoencoder_kernel(n_hidden, output_dim, mxu_dtype, x_ref, *refs):
    # refs layout:
    #   hidden weights/biases: (w0, b0, w1, b1, ..., w_{n-1}, b_{n-1})
    #   fused (mean||std, padded) head: (w_head, b_head)
    #   output:                 out_ref   -> [tb, out_pad] lane-dense block
    param_refs = refs[: 2 * n_hidden + 2]
    out_ref = refs[2 * n_hidden + 2]

    h = x_ref[...]  # f32

    # Hidden stack: Linear + ReLU (MXU dot, f32 accumulate, f32 elementwise).
    for i in range(n_hidden):
        w = param_refs[2 * i][...]
        b = param_refs[2 * i + 1][...]
        y = jnp.dot(h.astype(mxu_dtype), w.astype(mxu_dtype),
                    preferred_element_type=jnp.float32)
        h = jnp.maximum(y + b, 0.0)

    # Fused head: one matmul producing [tb, out_pad] (out_pad is a multiple of 128).
    wh = param_refs[2 * n_hidden][...]
    bh = param_refs[2 * n_hidden + 1][...]
    y = jnp.dot(h.astype(mxu_dtype), wh.astype(mxu_dtype),
                preferred_element_type=jnp.float32) + bh

    # Columns [0, O)      -> mean (identity)
    # Columns [O, 2O)     -> std  (softplus + 1e-6)
    # Columns [2O, pad)   -> zero padding (pass through, sliced off by caller)
    col = jax.lax.broadcasted_iota(jnp.int32, y.shape, 1)
    is_std = jnp.logical_and(col >= output_dim, col < 2 * output_dim)
    out_ref[...] = jnp.where(is_std, _softplus(y) + 1e-6, y).astype(out_ref.dtype)


def init_params(key, input_dim, output_dim, hidden_dims):
    """torch.nn.Linear-style init: U(-1/sqrt(in), 1/sqrt(in)).

    Weights stored as [in_features, out_features] (transposed vs torch),
    biases as [1, out_features].  Fully driven by the caller's `key`.
    Returns: [(w_h0, b_h0), ..., (w_hN, b_hN), (w_mean, b_mean), (w_std, b_std)]
    """
    params = []
    last = input_dim
    out_dims = list(hidden_dims) + [output_dim, output_dim]  # hidden..., mean, std
    fan_ins = []
    for out in out_dims:
        fan_ins.append(last)
        if len(fan_ins) <= len(hidden_dims):
            last = out
    for fan_in, out in zip(fan_ins, out_dims):
        key, kw, kb = jax.random.split(key, 3)
        bound = 1.0 / float(fan_in) ** 0.5
        w = jax.random.uniform(kw, (fan_in, out), jnp.float32, -bound, bound)
        b = jax.random.uniform(kb, (1, out), jnp.float32, -bound, bound)
        params.append((w, b))
    return params


def autoencoder_layer_forward(x, params, hidden_dims, output_dim, *,
                              block_batch=128, mxu_dtype=jnp.float32):
    n_hidden = len(hidden_dims)
    batch, input_dim = x.shape

    # ---- fuse mean/std heads and pad output lanes to a multiple of 128 ----
    wm, bm = params[n_hidden]
    ws, bs = params[n_hidden + 1]
    head_w = jnp.concatenate([wm, ws], axis=1)          # [H_last, 2*O]
    head_b = jnp.concatenate([bm, bs], axis=1)          # [1, 2*O]
    out_pad = _round_up(max(2 * output_dim, 128), 128)  # lane-dense output width
    pad_cols = out_pad - 2 * output_dim
    if pad_cols:
        head_w = jnp.pad(head_w, ((0, 0), (0, pad_cols)))
        head_b = jnp.pad(head_b, ((0, 0), (0, pad_cols)))

    # ---- batch tiling (grid over batch; weights resident across steps) ----
    tb = min(block_batch, _round_up(batch, 8))
    batch_pad = _round_up(batch, tb)
    x_p = x if batch_pad == batch else jnp.pad(x, ((0, batch_pad - batch), (0, 0)))
    grid = (batch_pad // tb,)

    flat = [x_p]
    flat_params = [p for i in range(n_hidden) for p in params[i]] + [head_w, head_b]
    flat.extend(flat_params)

    const_spec = lambda arr: pl.BlockSpec(arr.shape, lambda i: (0, 0))
    in_specs = [pl.BlockSpec((tb, input_dim), lambda i: (i, 0))]
    in_specs += [const_spec(p) for p in flat_params]
    out_specs = pl.BlockSpec((tb, out_pad), lambda i: (i, 0))

    # ---- advisory cost estimate ----
    flops = 0
    last = input_dim
    for h in hidden_dims:
        flops += 2 * batch_pad * last * h
        last = h
    flops += 2 * batch_pad * last * out_pad
    bytes_accessed = 4 * (x_p.size + sum(p.size for p in flat_params)
                          + batch_pad * out_pad)
    cost = pl.CostEstimate(flops=flops,
                           transcendentals=2 * batch_pad * out_pad,
                           bytes_accessed=bytes_accessed)

    kernel = functools.partial(_autoencoder_kernel, n_hidden, output_dim, mxu_dtype)

    out = pl.pallas_call(
        kernel,
        out_shape=jax.ShapeDtypeStruct((batch_pad, out_pad), jnp.float32),
        grid=grid,
        in_specs=in_specs,
        out_specs=out_specs,
        compiler_params=pltpu.CompilerParams(
            dimension_semantics=("parallel",)),
        cost_estimate=cost,
    )(*flat)

    mean = out[:batch, :output_dim]
    std = out[:batch, output_dim:2 * output_dim]
    return mean, std


def reference_forward(x, params, hidden_dims):
    """Pure-JAX f32 reference for correctness checking."""
    n_hidden = len(hidden_dims)
    h = x
    for i in range(n_hidden):
        w, b = params[i]
        h = jnp.maximum(h @ w + b, 0.0)
    wm, bm = params[n_hidden]
    ws, bs = params[n_hidden + 1]
    mean = h @ wm + bm
    pre = h @ ws + bs
    std = jnp.where(pre > 20.0, pre, jnp.log1p(jnp.exp(jnp.minimum(pre, 20.0)))) + 1e-6
    return mean, std


if __name__ == "__main__":
    input_dim = 32
    output_dim = 16
    hidden_dims = (64, 32)
    batch = 64           # small, but exercises the batch grid (2 steps at tb=32)

    key = jax.random.PRNGKey(0)
    kx, kp = jax.random.split(key)
    x = jax.random.normal(kx, (batch, input_dim), jnp.float32)
    params = init_params(kp, input_dim, output_dim, hidden_dims)

    # Default mxu_dtype=f32 so the result matches the f32 reference bit-for-bit in
    # tolerance; pass mxu_dtype=jnp.bfloat16 on v6e/v7x for MXU-rate / VMEM wins.
    mean, std = autoencoder_layer_forward(x, params, hidden_dims, output_dim,
                                          block_batch=32)
    mean, std = jax.block_until_ready(mean), jax.block_until_ready(std)

    ref_mean, ref_std = reference_forward(x, params, hidden_dims)
    assert mean.shape == (batch, output_dim) and std.shape == (batch, output_dim)
    assert jnp.allclose(mean, ref_mean, atol=1e-5, rtol=1e-5)
    assert jnp.allclose(std, ref_std, atol=1e-5, rtol=1e-5)
    assert bool(jnp.all(std > 0.0))

    print("KERNEL_OK")
</pallas_src>

<mosaic_0001>
module attributes {stable_mosaic.version = 11 : i64} {
  func.func @_autoencoder_kernel(%arg0: i32, %arg1: memref<32x32xf32, #tpu.memory_space<vmem>>, %arg2: memref<32x64xf32, #tpu.memory_space<vmem>>, %arg3: memref<1x64xf32, #tpu.memory_space<vmem>>, %arg4: memref<64x32xf32, #tpu.memory_space<vmem>>, %arg5: memref<1x32xf32, #tpu.memory_space<vmem>>, %arg6: memref<32x128xf32, #tpu.memory_space<vmem>>, %arg7: memref<1x128xf32, #tpu.memory_space<vmem>>, %arg8: memref<32x128xf32, #tpu.memory_space<vmem>>) attributes {dimension_semantics = [#tpu.dimension_semantics<parallel>], iteration_bounds = array<i64: 2>, scalar_prefetch = 0 : i64, scratch_operands = 0 : i64, tpu.core_type = #tpu.core_type<tc>, window_params = [{transform_indices = @transform_0, window_bounds = array<i64: 32, 32>}, {pipeline_mode = #tpu.pipeline_mode<synchronous>, transform_indices = @transform_1, window_bounds = array<i64: 32, 64>}, {pipeline_mode = #tpu.pipeline_mode<synchronous>, transform_indices = @transform_2, window_bounds = array<i64: 1, 64>}, {pipeline_mode = #tpu.pipeline_mode<synchronous>, transform_indices = @transform_3, window_bounds = array<i64: 64, 32>}, {pipeline_mode = #tpu.pipeline_mode<synchronous>, transform_indices = @transform_4, window_bounds = array<i64: 1, 32>}, {pipeline_mode = #tpu.pipeline_mode<synchronous>, transform_indices = @transform_5, window_bounds = array<i64: 32, 128>}, {pipeline_mode = #tpu.pipeline_mode<synchronous>, transform_indices = @transform_6, window_bounds = array<i64: 1, 128>}, {transform_indices = @transform_7, window_bounds = array<i64: 32, 128>}]} {
    %c0 = arith.constant 0 : index
    %c0_0 = arith.constant 0 : index
    %0 = vector.load %arg1[%c0, %c0_0] : memref<32x32xf32, #tpu.memory_space<vmem>>, vector<32x32xf32>
    %c0_1 = arith.constant 0 : index
    %c0_2 = arith.constant 0 : index
    %1 = vector.load %arg2[%c0_1, %c0_2] : memref<32x64xf32, #tpu.memory_space<vmem>>, vector<32x64xf32>
    %c0_3 = arith.constant 0 : index
    %c0_4 = arith.constant 0 : index
    %2 = vector.load %arg3[%c0_3, %c0_4] : memref<1x64xf32, #tpu.memory_space<vmem>>, vector<1x64xf32>
    %cst = arith.constant dense<0.000000e+00> : vector<32x64xf32>
    %3 = tpu.matmul %0, %1, %cst {dimension_numbers = #tpu.dot_dimension_numbers<[1], [0], [0], [1], [0, 0, 1, 1], [], []>} : vector<32x32xf32>, vector<32x64xf32>, vector<32x64xf32> -> vector<32x64xf32>
    %4 = vector.broadcast %2 : vector<1x64xf32> to vector<32x64xf32>
    %5 = arith.addf %3, %4 : vector<32x64xf32>
    %cst_5 = arith.constant 0.000000e+00 : f32
    %6 = vector.broadcast %cst_5 : f32 to vector<32x64xf32>
    %7 = arith.maximumf %5, %6 : vector<32x64xf32>
    %c0_6 = arith.constant 0 : index
    %c0_7 = arith.constant 0 : index
    %8 = vector.load %arg4[%c0_6, %c0_7] : memref<64x32xf32, #tpu.memory_space<vmem>>, vector<64x32xf32>
    %c0_8 = arith.constant 0 : index
    %c0_9 = arith.constant 0 : index
    %9 = vector.load %arg5[%c0_8, %c0_9] : memref<1x32xf32, #tpu.memory_space<vmem>>, vector<1x32xf32>
    %cst_10 = arith.constant dense<0.000000e+00> : vector<32x32xf32>
    %10 = tpu.matmul %7, %8, %cst_10 {dimension_numbers = #tpu.dot_dimension_numbers<[1], [0], [0], [1], [0, 0, 1, 1], [], []>} : vector<32x64xf32>, vector<64x32xf32>, vector<32x32xf32> -> vector<32x32xf32>
    %11 = vector.broadcast %9 : vector<1x32xf32> to vector<32x32xf32>
    %12 = arith.addf %10, %11 : vector<32x32xf32>
    %cst_11 = arith.constant 0.000000e+00 : f32
    %13 = vector.broadcast %cst_11 : f32 to vector<32x32xf32>
    %14 = arith.maximumf %12, %13 : vector<32x32xf32>
    %c0_12 = arith.constant 0 : index
    %c0_13 = arith.constant 0 : index
    %15 = vector.load %arg6[%c0_12, %c0_13] : memref<32x128xf32, #tpu.memory_space<vmem>>, vector<32x128xf32>
    %c0_14 = arith.constant 0 : index
    %c0_15 = arith.constant 0 : index
    %16 = vector.load %arg7[%c0_14, %c0_15] : memref<1x128xf32, #tpu.memory_space<vmem>>, vector<1x128xf32>
    %cst_16 = arith.constant dense<0.000000e+00> : vector<32x128xf32>
    %17 = tpu.matmul %14, %15, %cst_16 {dimension_numbers = #tpu.dot_dimension_numbers<[1], [0], [0], [1], [0, 0, 1, 1], [], []>} : vector<32x32xf32>, vector<32x128xf32>, vector<32x128xf32> -> vector<32x128xf32>
    %18 = vector.broadcast %16 : vector<1x128xf32> to vector<32x128xf32>
    %19 = arith.addf %17, %18 : vector<32x128xf32>
    %20 = tpu.iota {dimensions = array<i32: 1>} : vector<32x128xi32>
    %c16_i32 = arith.constant 16 : i32
    %21 = vector.broadcast %c16_i32 : i32 to vector<32x128xi32>
    %22 = arith.cmpi sge, %20, %21 : vector<32x128xi32>
    %c32_i32 = arith.constant 32 : i32
    %23 = vector.broadcast %c32_i32 : i32 to vector<32x128xi32>
    %24 = arith.cmpi slt, %20, %23 : vector<32x128xi32>
    %25 = arith.andi %22, %24 : vector<32x128xi1>
    %cst_17 = arith.constant 2.000000e+01 : f32
    %26 = vector.broadcast %cst_17 : f32 to vector<32x128xf32>
    %27 = arith.cmpf ogt, %19, %26 : vector<32x128xf32>
    %cst_18 = arith.constant 2.000000e+01 : f32
    %28 = vector.broadcast %cst_18 : f32 to vector<32x128xf32>
    %29 = arith.minimumf %19, %28 : vector<32x128xf32>
    %30 = math.exp %29 : vector<32x128xf32>
    %31 = math.log1p %30 : vector<32x128xf32>
    %32 = arith.select %27, %19, %31 : vector<32x128xi1>, vector<32x128xf32>
    %cst_19 = arith.constant 9.99999997E-7 : f32
    %33 = vector.broadcast %cst_19 : f32 to vector<32x128xf32>
    %34 = arith.addf %32, %33 : vector<32x128xf32>
    %35 = arith.select %25, %34, %19 : vector<32x128xi1>, vector<32x128xf32>
    %c0_20 = arith.constant 0 : index
    %c0_21 = arith.constant 0 : index
    %36 = vector.load %arg8[%c0_20, %c0_21] : memref<32x128xf32, #tpu.memory_space<vmem>>, vector<32x128xf32>
    tpu.vector_store %arg8[%c0_20, %c0_21], %35 {strides = array<i32>} : memref<32x128xf32, #tpu.memory_space<vmem>>, vector<32x128xf32>,
    return
  }
  func.func @transform_0(%arg0: i32) -> (i32, i32) {
    %c0_i32 = arith.constant 0 : i32
    %c0_i32_0 = arith.constant 0 : i32
    return %arg0, %c0_i32 : i32, i32
  }
  func.func @transform_1(%arg0: i32) -> (i32, i32) {
    %c0_i32 = arith.constant 0 : i32
    %c0_i32_0 = arith.constant 0 : i32
    %c0_i32_1 = arith.constant 0 : i32
    return %c0_i32, %c0_i32_0 : i32, i32
  }
  func.func @transform_2(%arg0: i32) -> (i32, i32) {
    %c0_i32 = arith.constant 0 : i32
    %c0_i32_0 = arith.constant 0 : i32
    %c0_i32_1 = arith.constant 0 : i32
    return %c0_i32, %c0_i32_0 : i32, i32
  }
  func.func @transform_3(%arg0: i32) -> (i32, i32) {
    %c0_i32 = arith.constant 0 : i32
    %c0_i32_0 = arith.constant 0 : i32
    %c0_i32_1 = arith.constant 0 : i32
    return %c0_i32, %c0_i32_0 : i32, i32
  }
  func.func @transform_4(%arg0: i32) -> (i32, i32) {
    %c0_i32 = arith.constant 0 : i32
    %c0_i32_0 = arith.constant 0 : i32
    %c0_i32_1 = arith.constant 0 : i32
    return %c0_i32, %c0_i32_0 : i32, i32
  }
  func.func @transform_5(%arg0: i32) -> (i32, i32) {
    %c0_i32 = arith.constant 0 : i32
    %c0_i32_0 = arith.constant 0 : i32
    %c0_i32_1 = arith.constant 0 : i32
    return %c0_i32, %c0_i32_0 : i32, i32
  }
  func.func @transform_6(%arg0: i32) -> (i32, i32) {
    %c0_i32 = arith.constant 0 : i32
    %c0_i32_0 = arith.constant 0 : i32
    %c0_i32_1 = arith.constant 0 : i32
    return %c0_i32, %c0_i32_0 : i32, i32
  }
  func.func @transform_7(%arg0: i32) -> (i32, i32) {
    %c0_i32 = arith.constant 0 : i32
    %c0_i32_0 = arith.constant 0 : i32
    return %arg0, %c0_i32 : i32, i32
  }
}

</mosaic_0001>

<bundles_post_ra>
// kernel: tpu_custom_call.1
= control target key start
LH: loop header
LB: loop body
LE: loop exit
PB: predicated region body
PF: predicated region fallthrough
CT: control target
= control target key end

     0   :  { %12 = vsyncpa [#allocation3], 0  ;;  %s967_s0 = inlined_call_operand.vmem [shape: f32[64,32], index: 0, kind: input, shape index: {}]   ;;  %s968_s1 = inlined_call_operand.vmem [shape: f32[32,64], index: 1, kind: input, shape index: {}]   ;;  %s969_s2 = inlined_call_operand.vmem [shape: f32[1,64], index: 2, kind: input, shape index: {}]   ;;  %s970_s3 = inlined_call_operand.vmem [shape: f32[64,32], index: 3, kind: input, shape index: {}]   ;;  %s971_s4 = inlined_call_operand.vmem [shape: f32[1,32], index: 4, kind: input, shape index: {}]   ;;  %s972_s5 = inlined_call_operand.vmem [shape: f32[32,128], index: 5, kind: input, shape index: {}]   ;;  %s973_s6 = inlined_call_operand.vmem [shape: f32[1,128], index: 6, kind: input, shape index: {}]   ;;  %s974_s7 = inlined_call_operand.hbm [shape: f32[64,128], index: 7, kind: output, shape index: {}]  }
   0x1   :  { %14 = vsyncpa [#allocation3 + $0x1], 0  ;;  %s795_s24 = smov 0   ;;  %s797_s25 = smov 0  }
   0x2   :  { %s799_s26 = smov 0   ;;  %s801_s27 = smov 0  }
   0x3 LB: > { %s816_s28 = sadd.s32 4294967295, %s751_s27   ;;  %s596_s29 = sadd.s32 4294967294, %s751_s27   ;;  %s751_s27 = sphi %s801_s27, %s982_s27   ;;  %s747_s26 = sphi %s799_s26, %s981_s26   ;;  %s743_s25 = sphi %s797_s25, %s980_s25   ;;  %s739_s24 = sphi %s795_s24, %s979_s24  }
   0x4   : > { %s820_s30 = sadd.s32 1, %s751_s27   ;;  %s179_s8 = sadd.s32 1, %s747_s26 }
   0x5   : > { %s176_s9 = ssub.s32 %s751_s27, %s820_s30  ;;  %p189_p0 = scmp.ne.s32.totalorder %s747_s26, %s743_s25 }
   0x6   : > { %p177_p1 = scmp.eq.s32.totalorder %s176_s9, 0  ;;  %p190_p2 = scmp.eq.s32.totalorder %s816_s28, 1 }
   0x7   : > { %p195_p3 = scmp.ne.s32.totalorder %s743_s25, %s739_s24  ;;  %p196_p4 = scmp.eq.s32.totalorder %s596_s29, 1 }
   0x8   : > { %s831_s10 = scalar_select %p177_p1, %s747_s26, %s179_s8  }
   0x9   : > { %p833_p5 = por %p190_p2, %p189_p0  ;;  %p837_p6 = por %p196_p4, %p195_p3 }
   0xa   : > { %p599_p7 = scmp.ge.s32.totalorder %s751_s27, 1  ;;  %p241_p8 = scmp.lt.s32.totalorder %s751_s27, 3 }
   0xc   : > { %p242_p9 = pnand %p599_p7, %p241_p8 }
   0xd   : > { %s601_s17 = sshll.u32 (!%p242_p9), %s816_s28, 2  ;;  %s620_s18 = sshll.u32 (!%p242_p9), %s816_s28, 5 }
   0xe   : > { %245 = sbr.rel (%p242_p9) target bundleno = 482 (0x1e2), region = 48  ;;  %p274_p10 = scmp.lt.s32.totalorder (!%p242_p9), %s601_s17, 7 }
   0xf   : > { %s530_s21 = scalar_lea.hbm (!%p242_p9), %s974_s7, %s620_s18  ;;  %s709_s13 = scalar_lea.hbm (!%p242_p9), %s974_s7, 64 }
  0x10   : > { %s533_s28 = sshll.u32 (!%p242_p9), %s530_s21, 4  ;;  %s534_s28 = int_to_ptr.hbm [resolvable:$true] %s533_s28 }
  0x11   : > { %s703_s23 = sshra.s32 (!%p242_p9), %s534_s28, 4  ;;  %s704_s23 = int_to_ptr.hbm [resolvable:$true] %s703_s23 }
  0x12   : > { %s705_s29 = scalar_lea.hbm (!%p242_p9), %s704_s23, 32  ;;  %p710_p0 = scmp.lt.s32.totalorder (!%p242_p9), %s704_s23, %s974_s7 }
  0x13   : > { %v287_v0 = vld [vmem:[%s968_s1 + $0x18] sm:$0xff]  ;;  %v286_v1 = vld [vmem:[%s968_s1 + $0x10] sm:$0xff]  ;;  %v285_v4 = vld [vmem:[%s968_s1 + $0x8] sm:$0xff]  ;;  %s984_s17 = smov (!%p274_p10, %s601_s17), 7  ;;  %vm292_vm0 = vcmask 261120   ;;  %vm350_vm1 = vcmask 523264   ;;  %v445_v52 = vlaneseq  ;;  %p706_p11 = scmp.ne.s32.totalorder %s704_s23, %s705_s29 }
  0x14   : > { %317 = vmatpush.msra.mxu0 %v287_v0  ;;  %v345_v2 = vld [vmem:[%s970_s3 + $0x38] sm:$0xff]  ;;  %v344_v3 = vld [vmem:[%s970_s3 + $0x30] sm:$0xff]  ;;  %v343_v5 = vld [vmem:[%s970_s3 + $0x28] sm:$0xff]  ;;  %s602_s14 = sshll.u32 %s984_s17, 3  ;;  %p711_p1 = scmp.lt.s32.totalorder %s709_s13, %s705_s29 }
  0x15   : > { %371 = vmatpush.msra.mxu1 %v345_v2  ;;  %621 = vmatpush.msra.mxu3 %v345_v2  ;;  %v284_v6 = vld [vmem:[%s968_s1] sm:$0xff]  ;;  %s277_s20 = scalar_lea.vmem %s967_s0, %s602_s14  ;;  %v341_v9 = vld [vmem:[%s970_s3 + $0x18] sm:$0xff]  ;;  %v340_v13 = vld [vmem:[%s970_s3 + $0x10] sm:$0xff]  ;;  %v446_v58 = vand.u32 127, %v445_v52  ;;  %s270_s14 = sand.u32 1, %s743_s25  }
  0x16   : > { %318 = vmatpush.msra.mxu0 %v286_v1  ;;  %v342_v7 = vld [vmem:[%s970_s3 + $0x20] sm:$0xff]  ;;  %v281_v10 = vld [vmem:[%s277_s20 + $0x8] sm:$0xff]  ;;  %v282_v11 = vld [vmem:[%s277_s20 + $0x10] sm:$0xff]  ;;  %s600_s15 = sshll.u32 %s270_s14, 5  ;;  %s519_s17 = scalar_lea.sflag [#allocation3], %s270_s14 }
  0x17   : > { %372 = vmatpush.msra.mxu1 %v344_v3  ;;  %622 = vmatpush.msra.mxu3 %v344_v3  ;;  %v280_v8 = vld [vmem:[%s277_s20] sm:$0xff]  ;;  %v283_v12 = vld [vmem:[%s277_s20 + $0x18] sm:$0xff]  ;;  %v339_v14 = vld [vmem:[%s970_s3 + $0x8] sm:$0xff]  ;;  %vm447_vm2 = vcmp.ge.s32.totalorder %v446_v58, 16  ;;  %vm448_vm3 = vcmp.lt.s32.totalorder %v446_v58, 32  ;;  %s921_s16 = scalar_lea.vmem [#allocation2], %s600_s15  ;;  %p707_p12 = pnand %p706_p11, %p833_p5 }
  0x18   : > { %319 = vmatpush.msra.mxu0 %v285_v4  ;;  %v338_v15 = vld [vmem:[%s970_s3] sm:$0xff]  ;;  %v399_v17 = vld [vmem:[%s972_s5 + $0x18] sm:$0xff]  ;;  %v398_v30 = vld [vmem:[%s972_s5 + $0x10] sm:$0xff]  ;;  %s531_s22 = sshll.u32 %s921_s16, 4  ;;  %p712_p2 = por %p711_p1, %p710_p0  ;;  %s532_s22 = int_to_ptr.vmem [resolvable:$true] %s531_s22 }
  0x19   : > { %373 = vmatpush.msra.mxu1 %v343_v5  ;;  %623 = vmatpush.msra.mxu3 %v343_v5  ;;  %v670_v16 = vld [vmem:[%s969_s2] ss:$0 sm:$0xff]  ;;  %v397_v31 = vld [vmem:[%s972_s5 + $0x8] sm:$0xff]  ;;  %vm915_vm6 = vmand %vm447_vm2, %vm448_vm3  ;;  %p708_p13 = pneg %p707_p12 }
  0x1a   : > { %320 = vmatpush.msra.mxu0 %v284_v6  ;;  %428 = vmatpush.msra.mxu2 %v399_v17  ;;  %v396_v32 = vld [vmem:[%s972_s5] sm:$0xff] }
  0x1b   : > { %603 = vmatmul.msk.f32.vlgmr.msra.gmra.mxu0 %vm292_vm0, %v280_v8  ;;  %374 = vmatpush.msra.mxu1 %v342_v7  ;;  %v671_v33 = vld [vmem:[%s971_s4] ss:$0 sm:$0xff]  ;;  %p713_p3 = pnand %p712_p2, %p708_p13 }
  0x1c   : > { %624 = vmatpush.msra.mxu3 %v342_v7  ;;  %429 = vmatpush.msra.mxu2 %v398_v30  ;;  %v672_v46 = vld [vmem:[%s973_s6] ss:$0 sm:$0xff] }
  0x1d   : > { %375 = vmatpush.msra.mxu1 %v341_v9 }
  0x1e   : > { %625 = vmatpush.msra.mxu3 %v341_v9  ;;  %430 = vmatpush.msra.mxu2 %v397_v31 }
  0x1f   : > { %376 = vmatpush.msra.mxu1 %v340_v13 }
  0x20   : > { %626 = vmatpush.msra.mxu3 %v340_v13  ;;  %431 = vmatpush.msra.mxu2 %v396_v32 }
  0x21   : > { %377 = vmatpush.msra.mxu1 %v339_v14 }
  0x22   : > { %627 = vmatpush.msra.mxu3 %v339_v14 }
  0x23   : > { %604 = vmatmul.msk.f32.gmra.mxu0 %vm292_vm0, %v281_v10  ;;  %378 = vmatpush.msra.mxu1 %v338_v15 }
  0x24   : > { %628 = vmatpush.msra.mxu3 %v338_v15 }
  0x2b   : > { %605 = vmatmul.msk.f32.gmra.mxu0 %vm292_vm0, %v282_v11 }
  0x33   : > { %606 = vmatmul.msk.f32.gmra.mxu0 %vm292_vm0, %v283_v12 }
  0x98   : > { %v322_v18 = vpop.f32.mrf.mxu0 }
  0x99   : > { %v323_v19 = vadd.f32 %v670_v16, %v322_v18 }
  0x9b   : > { %v334_v20 = vmax.f32 %v323_v19, 0.0 }
  0x9d   : > { %607 = vmatmul.msk.f32.vlgmr.msra.gmra.mxu1 %vm350_vm1, %v334_v20 }
  0xa0   : > { %v325_v21 = vpop.f32.mrf.mxu0 }
  0xa1   : > { %v326_v22 = vadd.f32 %v670_v16, %v325_v21 }
  0xa3   : > { %v335_v23 = vmax.f32 %v326_v22, 0.0 }
  0xa5   : > { %608 = vmatmul.msk.f32.vlgmr.msra.gmra.mxu3 %vm350_vm1, %v335_v23 }
  0xa8   : > { %v328_v24 = vpop.f32.mrf.mxu0 }
  0xa9   : > { %v329_v25 = vadd.f32 %v670_v16, %v328_v24 }
  0xab   : > { %v336_v26 = vmax.f32 %v329_v25, 0.0 }
  0xad   : > { %609 = vmatmul.msk.f32.gmra.mxu3 %vm350_vm1, %v336_v26 }
  0xb0   : > { %v331_v27 = vpop.f32.mrf.mxu0 }
  0xb1   : > { %v332_v28 = vadd.f32 %v670_v16, %v331_v27 }
  0xb3   : > { %v337_v29 = vmax.f32 %v332_v28, 0.0 }
  0xb5   : > { %610 = vmatmul.msk.f32.gmra.mxu3 %vm350_vm1, %v337_v29 }
 0x11a   : > { %v380_v34 = vpop.f32.mrf.mxu1 }
 0x11b   : > { %v381_v35 = vadd.f32 %v671_v33, %v380_v34 }
 0x11d   : > { %v392_v36 = vmax.f32 %v381_v35, 0.0 }
 0x11f   : > { %611 = vmatmul.msk.f32.vlgmr.msra.gmra.mxu2 %vm292_vm0, %v392_v36 }
 0x128   : > { %v383_v37 = vpop.f32.mrf.mxu3 }
 0x129   : > { %v384_v38 = vadd.f32 %v671_v33, %v383_v37 }
 0x12b   : > { %v393_v39 = vmax.f32 %v384_v38, 0.0 }
 0x12d   : > { %612 = vmatmul.msk.f32.gmra.mxu2 %vm292_vm0, %v393_v39 }
 0x130   : > { %v386_v40 = vpop.f32.mrf.mxu3 }
 0x131   : > { %v387_v41 = vadd.f32 %v671_v33, %v386_v40 }
 0x133   : > { %v394_v42 = vmax.f32 %v387_v41, 0.0 }
 0x135   : > { %613 = vmatmul.msk.f32.gmra.mxu2 %vm292_vm0, %v394_v42 }
 0x138   : > { %v389_v43 = vpop.f32.mrf.mxu3 }
 0x139   : > { %v390_v44 = vadd.f32 %v671_v33, %v389_v43 }
 0x13b   : > { %v395_v45 = vmax.f32 %v390_v44, 0.0 }
 0x13d   : > { %614 = vmatmul.msk.f32.gmra.mxu2 %vm292_vm0, %v395_v45 }
 0x1a2   : > { %v433_v47 = vpop.f32.mrf.mxu2 }
 0x1a3   : > { %v434_v48 = vadd.f32 %v672_v46, %v433_v47 }
 0x1a5   : > { %v454_v49 = vmin.f32 %v434_v48, 20.0  ;;  %vm450_vm5 = vcmp.gt.f32.partialorder %v434_v48, 20.0 }
 0x1a7   : > { %v458_v50 = vmul.f32 1.442695, %v454_v49 }
 0x1a9   : > { %673 = vpow2.f32 %v458_v50 }
 0x1af   : > { %v674_v51 = vpop.eup %673 }
 0x1b0   : > { %v466_v53 = vadd.f32 1.0, %v674_v51  ;;  %v436_v54 = vpop.f32.mrf.mxu2  ;;  %v469_v55 = vmul.f32 -0.5, %v674_v51  ;;  %v472_v61 = vand.u32 2147483647, %v674_v51 }
 0x1b1   : > { %v437_v56 = vadd.f32 %v672_v46, %v436_v54 }
 0x1b2   : > { %675 = vlog2.f32 %v466_v53  ;;  %v470_v59 = vadd.f32 1.0, %v469_v55  ;;  %vm473_vm4 = vcmp.lt.f32.partialorder %v472_v61, 0.0004427343 }
 0x1b3   : > { %v455_v57 = vmin.f32 %v437_v56, 20.0  ;;  %vm451_vm8 = vcmp.gt.f32.partialorder %v437_v56, 20.0 }
 0x1b4   : > { %v471_v1 = vmul.f32 %v674_v51, %v470_v59 }
 0x1b5   : > { %v460_v60 = vmul.f32 1.442695, %v455_v57 }
 0x1b7   : > { %677 = vpow2.f32 %v460_v60 }
 0x1b8   : > { %v676_v62 = vpop.eup %675  ;;  %v439_v63 = vpop.f32.mrf.mxu2 }
 0x1b9   : > { %v468_v0 = vmul.f32 0.6931472, %v676_v62  ;;  %v440_v2 = vadd.f32 %v672_v46, %v439_v63 }
 0x1bb   : > { %v474_v3 = vsel %vm473_vm4, %v471_v1, %v468_v0  ;;  %v456_v4 = vmin.f32 %v440_v2, 20.0  ;;  %vm452_vm10 = vcmp.gt.f32.partialorder %v440_v2, 20.0 }
 0x1bc   : > { %v502_v6 = vsel %vm450_vm5, %v434_v48, %v474_v3 }
 0x1bd   : > { %v678_v7 = vpop.eup %677  ;;  %v506_v8 = vadd.f32 1e-06, %v502_v6  ;;  %v462_v9 = vmul.f32 1.442695, %v456_v4 }
 0x1be   : > { %v475_v10 = vadd.f32 1.0, %v678_v7  ;;  %v478_v12 = vmul.f32 -0.5, %v678_v7  ;;  %v481_v17 = vand.u32 2147483647, %v678_v7 }
 0x1bf   : > { %v510_v11 = vsel %vm915_vm6, %v506_v8, %v434_v48  ;;  %679 = vpow2.f32 %v462_v9 }
 0x1c0   : > { %514 = vst [vmem:[%s921_s16] sm:$0xff] %v510_v11  ;;  %681 = vlog2.f32 %v475_v10  ;;  %v442_v13 = vpop.f32.mrf.mxu2  ;;  %v479_v15 = vadd.f32 1.0, %v478_v12  ;;  %vm482_vm7 = vcmp.lt.f32.partialorder %v481_v17, 0.0004427343 }
 0x1c1   : > { %v443_v14 = vadd.f32 %v672_v46, %v442_v13 }
 0x1c2   : > { %v480_v23 = vmul.f32 %v678_v7, %v479_v15 }
 0x1c3   : > { %v457_v16 = vmin.f32 %v443_v14, 20.0  ;;  %vm453_vm12 = vcmp.gt.f32.partialorder %v443_v14, 20.0 }
 0x1c5   : > { %v680_v18 = vpop.eup %679  ;;  %v464_v19 = vmul.f32 1.442695, %v457_v16 }
 0x1c6   : > { %v682_v20 = vpop.eup %681  ;;  %v484_v21 = vadd.f32 1.0, %v680_v18  ;;  %v487_v24 = vmul.f32 -0.5, %v680_v18  ;;  %v490_v29 = vand.u32 2147483647, %v680_v18 }
 0x1c7   : > { %v477_v22 = vmul.f32 0.6931472, %v682_v20  ;;  %683 = vpow2.f32 %v464_v19 }
 0x1c8   : > { %685 = vlog2.f32 %v484_v21  ;;  %v488_v28 = vadd.f32 1.0, %v487_v24  ;;  %vm491_vm9 = vcmp.lt.f32.partialorder %v490_v29, 0.0004427343 }
 0x1c9   : > { %v483_v25 = vsel %vm482_vm7, %v480_v23, %v477_v22 }
 0x1ca   : > { %v503_v26 = vsel %vm451_vm8, %v437_v56, %v483_v25  ;;  %v489_v35 = vmul.f32 %v680_v18, %v488_v28 }
 0x1cb   : > { %v507_v27 = vadd.f32 1e-06, %v503_v26 }
 0x1cd   : > { %v684_v30 = vpop.eup %683  ;;  %v511_v31 = vsel %vm915_vm6, %v507_v27, %v437_v56 }
 0x1ce   : > { %v686_v32 = vpop.eup %685  ;;  %515 = vst [vmem:[%s921_s16 + $0x8] sm:$0xff] %v511_v31  ;;  %v493_v33 = vadd.f32 1.0, %v684_v30  ;;  %v496_v36 = vmul.f32 -0.5, %v684_v30  ;;  %v499_v41 = vand.u32 2147483647, %v684_v30 }
 0x1cf   : > { %v486_v34 = vmul.f32 0.6931472, %v686_v32 }
 0x1d0   : > { %687 = vlog2.f32 %v493_v33  ;;  %v497_v40 = vadd.f32 1.0, %v496_v36  ;;  %vm500_vm11 = vcmp.lt.f32.partialorder %v499_v41, 0.0004427343 }
 0x1d1   : > { %v492_v37 = vsel %vm491_vm9, %v489_v35, %v486_v34 }
 0x1d2   : > { %v504_v38 = vsel %vm452_vm10, %v440_v2, %v492_v37  ;;  %v498_v45 = vmul.f32 %v684_v30, %v497_v40 }
 0x1d3   : > { %v508_v39 = vadd.f32 1e-06, %v504_v38 }
 0x1d5   : > { %v512_v42 = vsel %vm915_vm6, %v508_v39, %v440_v2 }
 0x1d6   : > { %v688_v43 = vpop.eup %687  ;;  %516 = vst [vmem:[%s921_s16 + $0x10] sm:$0xff] %v512_v42 }
 0x1d7   : > { %v495_v44 = vmul.f32 0.6931472, %v688_v43 }
 0x1d9   : > { %v501_v46 = vsel %vm500_vm11, %v498_v45, %v495_v44 }
 0x1da   : > { %v505_v47 = vsel %vm453_vm12, %v443_v14, %v501_v46 }
 0x1db   : > { %v509_v48 = vadd.f32 1e-06, %v505_v47 }
 0x1dd   : > { %v513_v49 = vsel %vm915_vm6, %v509_v48, %v443_v14 }
 0x1de   : > { %517 = vst [vmem:[%s921_s16 + $0x18] sm:$0xff] %v513_v49 }
 0x1df   : > { %716 = shalt.err (!%p713_p3)
}
 0x1e0   : > { %s753_s14 = smov 128   ;;  %s754_s16 = smov 8  }
 0x1e1   : > { %629 = dma.vmem_to_hbm [thread:$0]  (%p833_p5), %s532_s22, 512, %s534_s28, %s519_s17, %s753_s14, %s753_s14, %s754_s16  }
 0x1e2 PF: > { %p635_p4 = scmp.ge.s32.totalorder %s751_s27, 2  ;;  %s548_s19 = sand.u32 1, %s739_s24  }
 0x1e3   : > { %s549_s20 = scalar_lea.sflag [#allocation3], %s548_s19 }
 0x1e4   : > { %p632_p7 = pnand %p635_p4, %p837_p6 }
 0x1e6   : > { %p633_p8 = pneg %p632_p7 }
 0x1e8   : > { %734 = dma.done.wait (%p633_p8), %s549_s20, 512  }
 0x1e9   : > { %736 = vsyncadd (%p633_p8), %s549_s20, 4294966784  ;;  %p17_p9 = scmp.ge.s32.totalorder %s820_s30, 4   ;;  %s979_s24 = smov %s743_s25 }
 0x1ea   : > { %s980_s25 = smov %s747_s26  ;;  %s981_s26 = smov %s831_s10 }
 0x1eb   : > { %s982_s27 = smov %s820_s30  ;;  %19 = sbr.rel (!%p17_p9) target bundleno = 3 (0x3), region = 83 }
 0x1f0   :  { %555 = vsyncpa [#allocation3], 1 }
 0x1f1   :  { %557 = vsyncpa [#allocation3 + $0x1], 1 }

</bundles_post_ra>
